<compile_context>
chip_gen: v7x
topology: tpu7x:2x2x1
jax: 0.10.0
libtpu: 0.0.40
codegen_flags: <defaults>
</compile_context>

<pallas_src>
import math

import jax
import jax.numpy as jnp
from jax.experimental import pallas as pl
from jax.experimental.pallas import tpu as pltpu


def _rule_layer_kernel(scalar_ref, hidden_ref, p_ref, out_ref):
    # scalar_ref : SMEM (1, 2) f32  -> [q = eps/(eps-1), n_variables - 1]
    # hidden_ref : VMEM (V, TN)     native dtype (f32 or bf16)
    # p_ref      : VMEM (V, TN) f32 pre-tiled exponents mask*(eps-1)/eps
    # out_ref    : VMEM (1, TN) f32 lane-dense output slab
    q = scalar_ref[0, 0]
    vm1 = scalar_ref[0, 1]

    h = hidden_ref[...].astype(jnp.float32)       # (V, TN)
    p = p_ref[...]                                # (V, TN)

    # h ** p via exp(p*log(h)); guard p==0 so pow(x,0)==1 (matches torch.pow
    # for masked-off connections even if a firing strength is exactly 0).
    t = jnp.where(p == 0.0, 1.0, jnp.exp(p * jnp.log(h)))

    s = jnp.sum(t, axis=0, keepdims=True) - vm1   # (1, TN)

    # s ** q
    out_ref[...] = jnp.exp(q * jnp.log(s))


def _choose_batch_tile(B, V, R, itemsize):
    """Largest batch tile TB such that TB*R is lane-aligned (multiple of 128),
    TB divides B, and the hidden block stays around ~2 MiB. Falls back to the
    full batch (full-extent block is exempt from the 128 constraint)."""
    unit = 128 // math.gcd(R, 128)          # smallest TB with (TB*R) % 128 == 0
    target_bytes = 2 * 1024 * 1024
    tb_cap = max(1, target_bytes // max(1, V * R * itemsize))
    t = (min(B, tb_cap) // unit) * unit
    while t >= unit:
        if B % t == 0:
            return t
        t -= unit
    return B


def rule_layer_for_variables(hidden, connection_mask, epsilon):
    """hidden: (B, V, R) float (f32/bf16), connection_mask: (V, R), epsilon: scalar.

    Returns the rule firing strengths with shape (B, R), float32.
    """
    B, V, R = hidden.shape
    assert connection_mask.shape == (V, R)

    eps = jnp.asarray(epsilon, jnp.float32)
    c = (eps - 1.0) / eps              # scalar, computed once in the wrapper
    q = eps / (eps - 1.0)              # scalar, computed once in the wrapper

    itemsize = jnp.dtype(hidden.dtype).itemsize
    TB = _choose_batch_tile(B, V, R, itemsize)
    TN = TB * R
    N = B * R
    n_tiles = N // TN

    # Lane-dense layout: lanes = flattened (batch, rule), batch-major.
    hidden2d = jnp.transpose(hidden, (1, 0, 2)).reshape(V, N)

    # Pre-tiled exponent block (identical for every grid step).
    p_tile = jnp.tile(connection_mask.astype(jnp.float32) * c, (1, TB))  # (V, TN)

    scalars = jnp.stack([q, jnp.float32(V - 1)]).reshape(1, 2)

    out2d = pl.pallas_call(
        _rule_layer_kernel,
        out_shape=jax.ShapeDtypeStruct((1, N), jnp.float32),
        grid=(n_tiles,),
        in_specs=[
            pl.BlockSpec(memory_space=pltpu.SMEM),            # [q, V-1] scalars
            pl.BlockSpec((V, TN), lambda i: (0, i)),          # hidden lane tile
            pl.BlockSpec((V, TN), lambda i: (0, 0)),          # exponents (resident)
        ],
        out_specs=pl.BlockSpec((1, TN), lambda i: (0, i)),    # lane-dense output
        compiler_params=pltpu.CompilerParams(
            dimension_semantics=("parallel",)),
    )(scalars, hidden2d, p_tile)

    return out2d.reshape(B, R)


def _reference(hidden, connection_mask, epsilon):
    V = hidden.shape[1]
    h = hidden.astype(jnp.float32)
    temp = h ** (connection_mask[None].astype(jnp.float32) * (epsilon - 1.0) / epsilon)
    temp = jnp.sum(temp, axis=1) - (V - 1.0)
    return temp ** (epsilon / (epsilon - 1.0))


if __name__ == "__main__":
    key = jax.random.PRNGKey(0)
    k1, k2 = jax.random.split(key)

    B, V, R = 2, 4, 16          # batch, n_variables (len(category_info)), n_rules
    epsilon = 0.8

    # firing strengths in (0, 1) -> strictly positive base for fractional powers
    hidden = jax.random.uniform(k1, (B, V, R), jnp.float32, minval=0.2, maxval=0.95)
    # binary connection matrix
    connection_mask = (jax.random.uniform(k2, (V, R)) > 0.5).astype(jnp.float32)

    out = rule_layer_for_variables(hidden, connection_mask, epsilon)
    out = jax.block_until_ready(out)

    ref = _reference(hidden, connection_mask, epsilon)
    assert out.shape == (B, R)
    assert jnp.allclose(out, ref, rtol=1e-4, atol=1e-5), (out, ref)

    print("KERNEL_OK")
</pallas_src>

<mosaic_0001>
module attributes {stable_mosaic.version = 11 : i64} {
  func.func @_rule_layer_kernel(%arg0: i32, %arg1: memref<1x2xf32, #tpu.memory_space<smem>>, %arg2: memref<4x32xf32, #tpu.memory_space<vmem>>, %arg3: memref<4x32xf32, #tpu.memory_space<vmem>>, %arg4: memref<1x32xf32, #tpu.memory_space<vmem>>) attributes {dimension_semantics = [#tpu.dimension_semantics<parallel>], iteration_bounds = array<i64: 1>, scalar_prefetch = 0 : i64, scratch_operands = 0 : i64, tpu.core_type = #tpu.core_type<tc>, window_params = [{transform_indices = @transform_0, window_bounds = array<i64: 1, 2>}, {transform_indices = @transform_1, window_bounds = array<i64: 4, 32>}, {pipeline_mode = #tpu.pipeline_mode<synchronous>, transform_indices = @transform_2, window_bounds = array<i64: 4, 32>}, {transform_indices = @transform_3, window_bounds = array<i64: 1, 32>}]} {
    %c0 = arith.constant 0 : index
    %c0_0 = arith.constant 0 : index
    %0 = memref.load %arg1[%c0, %c0_0] : memref<1x2xf32, #tpu.memory_space<smem>>
    %c0_1 = arith.constant 0 : index
    %c1 = arith.constant 1 : index
    %1 = memref.load %arg1[%c0_1, %c1] : memref<1x2xf32, #tpu.memory_space<smem>>
    %c0_2 = arith.constant 0 : index
    %c0_3 = arith.constant 0 : index
    %2 = vector.load %arg2[%c0_2, %c0_3] : memref<4x32xf32, #tpu.memory_space<vmem>>, vector<4x32xf32>
    %c0_4 = arith.constant 0 : index
    %c0_5 = arith.constant 0 : index
    %3 = vector.load %arg3[%c0_4, %c0_5] : memref<4x32xf32, #tpu.memory_space<vmem>>, vector<4x32xf32>
    %cst = arith.constant 0.000000e+00 : f32
    %4 = vector.broadcast %cst : f32 to vector<4x32xf32>
    %5 = arith.cmpf oeq, %3, %4 : vector<4x32xf32>
    %6 = math.log %2 : vector<4x32xf32>
    %7 = arith.mulf %3, %6 : vector<4x32xf32>
    %8 = math.exp %7 : vector<4x32xf32>
    %cst_6 = arith.constant 1.000000e+00 : f32
    %9 = vector.broadcast %cst_6 : f32 to vector<4x32xf32>
    %10 = arith.select %5, %9, %8 : vector<4x32xi1>, vector<4x32xf32>
    %cst_7 = arith.constant dense<0.000000e+00> : vector<32xf32>
    %11 = vector.multi_reduction <add>, %10, %cst_7 [0] : vector<4x32xf32> to vector<32xf32>
    %12 = vector.shape_cast %11 : vector<32xf32> to vector<1x32xf32>
    %13 = vector.broadcast %1 : f32 to vector<1x32xf32>
    %14 = arith.subf %12, %13 : vector<1x32xf32>
    %15 = math.log %14 : vector<1x32xf32>
    %16 = vector.broadcast %0 : f32 to vector<1x32xf32>
    %17 = arith.mulf %16, %15 : vector<1x32xf32>
    %18 = math.exp %17 : vector<1x32xf32>
    %c0_8 = arith.constant 0 : index
    %c0_9 = arith.constant 0 : index
    %19 = vector.load %arg4[%c0_8, %c0_9] : memref<1x32xf32, #tpu.memory_space<vmem>>, vector<1x32xf32>
    tpu.vector_store %arg4[%c0_8, %c0_9], %18 {strides = array<i32>} : memref<1x32xf32, #tpu.memory_space<vmem>>, vector<1x32xf32>,
    return
  }
  func.func @transform_0(%arg0: i32) -> (i32, i32) {
    %c0_i32 = arith.constant 0 : i32
    %c0_i32_0 = arith.constant 0 : i32
    %c0_i32_1 = arith.constant 0 : i32
    return %c0_i32, %c0_i32_0 : i32, i32
  }
  func.func @transform_1(%arg0: i32) -> (i32, i32) {
    %c0_i32 = arith.constant 0 : i32
    %c0_i32_0 = arith.constant 0 : i32
    return %c0_i32, %arg0 : i32, i32
  }
  func.func @transform_2(%arg0: i32) -> (i32, i32) {
    %c0_i32 = arith.constant 0 : i32
    %c0_i32_0 = arith.constant 0 : i32
    %c0_i32_1 = arith.constant 0 : i32
    return %c0_i32, %c0_i32_0 : i32, i32
  }
  func.func @transform_3(%arg0: i32) -> (i32, i32) {
    %c0_i32 = arith.constant 0 : i32
    %c0_i32_0 = arith.constant 0 : i32
    return %c0_i32, %arg0 : i32, i32
  }
}

</mosaic_0001>

<bundles_post_ra>
// kernel: tpu_custom_call.1
= control target key start
LH: loop header
LB: loop body
LE: loop exit
PB: predicated region body
PF: predicated region fallthrough
CT: control target
= control target key end

     0   :  { %8 = vsyncpa [#allocation5], 0  ;;  %s217_s0 = inlined_call_operand.hbm [shape: f32[1,2], index: 0, kind: input, shape index: {}]   ;;  %s218_s1 = inlined_call_operand.hbm [shape: f32[4,32], index: 1, kind: input, shape index: {}]   ;;  %s219_s2 = inlined_call_operand.vmem [shape: f32[4,32], index: 2, kind: input, shape index: {}]   ;;  %s220_s3 = inlined_call_operand.hbm [shape: f32[1,32], index: 3, kind: output, shape index: {}]  }
   0x1   :  { %9 = vsyncpa [#allocation3], 0 }
   0x2   :  { %10 = vsyncpa [#allocation4], 0  ;;  %s95_s14 = scalar_lea.hbm %s217_s0, 16 }
   0x3   :  { %p96_p0 = scmp.ne.s32.totalorder %s217_s0, %s95_s14  ;;  %p99_p1 = scmp.lt.u32.totalorder %s95_s14, %s217_s0 }
   0x5   :  { %p101_p2 = pnand %p99_p1, %p96_p0 }
   0x7   :  { %104 = shalt.err (!%p101_p2)
}
   0x8   :  { %s155_s19 = smov [#allocation2]   ;;  %s156_s22 = smov [#allocation6]  }
   0x9   :  { %18 = dma.hbm_to_smem %s217_s0, 16, %s155_s19, [#allocation5]  }
   0xa   :  { %s25_s23 = sshll.u32 %s156_s22, 4  ;;  %s105_s26 = scalar_lea.hbm %s218_s1, 64  ;;  %s26_s23 = int_to_ptr.vmem [resolvable:$true] %s25_s23 }
   0xb   :  { %p106_p3 = scmp.ne.s32.totalorder %s218_s1, %s105_s26  ;;  %p109_p4 = scmp.lt.u32.totalorder %s105_s26, %s218_s1 }
   0xd   :  { %p111_p5 = pnand %p109_p4, %p106_p3 }
   0xf   :  { %114 = shalt.err (!%p111_p5)
}
  0x10   :  { %s115_s4 = scalar_lea.vmem %s26_s23, 64  ;;  %p120_p7 = scmp.lt.s32.totalorder %s26_s23, %s26_s23 }
  0x11   :  { %p116_p6 = scmp.ne.s32.totalorder %s26_s23, %s115_s4  ;;  %p121_p8 = scmp.lt.s32.totalorder %s115_s4, %s115_s4 }
  0x13   :  { %p122_p9 = por %p121_p8, %p120_p7 }
  0x15   :  { %p123_p10 = pnand %p122_p9, %p116_p6 }
  0x17   :  { %126 = shalt.err (!%p123_p10)
}
  0x18   :  { %28 = dma.hbm_to_vmem [thread:$0]  %s218_s1, 64, %s26_s23, [#allocation3]  }
  0x19   :  { %149 = dma.done.wait [#allocation5], 16  }
  0x1a   :  { %150 = vsyncadd [#allocation5], 4294967280 }
  0x1b   :  { %151 = dma.done.wait [#allocation3], 64  }
  0x1c   :  { %152 = vsyncadd [#allocation3], 4294967232 }
  0x1d   :  { %37 = sfence }
  0x1e   :  { %v40_v0 = vld [vmem:[#allocation6] sm:$0xf]  ;;  %v41_v2 = vld [vmem:[%s219_s2] sm:$0xf]  ;;  %vm49_vm1 = vcmask 257024   ;;  %s83_s1 = sld [smem:[#allocation2 + $0x1]] }
  0x1f   :  { %87 = vlog2.f32 %v40_v0  ;;  %vm42_vm0 = vcmp.eq.f32.partialorder %v41_v2, 0.0  ;;  %s38_s2 = sld [smem:[#allocation2]]  ;;  %s157_s8 = smov [#allocation7]   ;;  %vm65_vm2 = vcmask 253952  }
  0x20   :  { %s73_s9 = sshll.u32 %s157_s8, 4  ;;  %s74_s9 = int_to_ptr.vmem [resolvable:$true] %s73_s9 }
  0x21   :  { %s127_s10 = scalar_lea.vmem %s74_s9, 16  ;;  %s131_s11 = scalar_lea.vmem %s74_s9, 32 }
  0x22   :  { %p128_p11 = scmp.ne.s32.totalorder %s74_s9, %s127_s10  ;;  %p132_p12 = scmp.lt.s32.totalorder %s74_s9, %s74_s9 }
  0x23   :  { %p133_p13 = scmp.lt.s32.totalorder %s131_s11, %s127_s10 }
  0x24   :  { %v57_v14 = vstv %s83_s1 }
  0x25   :  { %v61_v18 = vstv %s38_s2  ;;  %p134_p0 = por %p133_p13, %p132_p12 }
  0x27   :  { %p135_p1 = pnand %p134_p0, %p128_p11 }
  0x29   :  { %v88_v1 = vpop.eup %87 }
  0x2a   :  { %v44_v3 = vmul.f32 0.6931472, %v88_v1 }
  0x2c   :  { %v45_v4 = vmul.f32 %v44_v3, %v41_v2 }
  0x2e   :  { %v46_v5 = vmul.f32 1.442695, %v45_v4 }
  0x30   :  { %89 = vpow2.f32 %v46_v5 }
  0x3a   :  { %v90_v6 = vpop.eup %89 }
  0x3b   :  { %v48_v7 = vsel %vm42_vm0, 1.0, %v90_v6 }
  0x3c   :  { %v50_v8 = vsel %vm49_vm1, %v48_v7, 0.0 }
  0x3d   :  { %v51_v9 = vrot.slane %v50_v8, 4 }
  0x3f   :  { %v52_v10 = vadd.f32 %v51_v9, %v50_v8 }
  0x41   :  { %v53_v11 = vrot.slane %v52_v10, 2 }
  0x43   :  { %v54_v12 = vadd.f32 %v53_v11, %v52_v10 }
  0x45   :  { %v55_v13 = vrot.slane %v54_v12, 1 }
  0x47   :  { %v56_v15 = vadd.f32 %v55_v13, %v54_v12 }
  0x49   :  { %v58_v16 = vsub.f32 %v56_v15, %v57_v14 }
  0x4b   :  { %91 = vlog2.f32 %v58_v16 }
  0x55   :  { %v92_v17 = vpop.eup %91 }
  0x56   :  { %v60_v19 = vmul.f32 0.6931472, %v92_v17 }
  0x58   :  { %v62_v20 = vmul.f32 %v61_v18, %v60_v19 }
  0x5a   :  { %v63_v21 = vmul.f32 1.442695, %v62_v20 }
  0x5c   :  { %93 = vpow2.f32 %v63_v21 }
  0x66   :  { %v94_v22 = vpop.eup %93 }
  0x67   :  { %66 = vst.msk [vmem:[#allocation7] sm:$0x1] %vm65_vm2, %v94_v22 }
  0x68   :  { %138 = shalt.err (!%p135_p1)
}
  0x69   :  { %s139_s14 = scalar_lea.hbm %s220_s3, 16 }
  0x6a   :  { %p140_p2 = scmp.ne.s32.totalorder %s220_s3, %s139_s14  ;;  %p143_p3 = scmp.lt.u32.totalorder %s139_s14, %s220_s3 }
  0x6c   :  { %p145_p4 = pnand %p143_p3, %p140_p2 }
  0x6e   :  { %148 = shalt.err (!%p145_p4)
}
  0x6f   :  { %76 = dma.vmem_to_hbm [thread:$0]  %s74_s9, 16, %s220_s3, [#allocation4]  }
  0x70   :  { %153 = dma.done.wait [#allocation4], 16  }
  0x71   :  { %154 = vsyncadd [#allocation4], 4294967280 }
  0x72   :  { %80 = vsyncpa [#allocation3], 1 }
  0x73   :  { %81 = vsyncpa [#allocation4], 1 }
  0x74   :  { %82 = vsyncpa [#allocation5], 1 }

</bundles_post_ra>
